<compile_context>
chip_gen: v7x
topology: tpu7x:2x2x1
jax: 0.10.0
libtpu: 0.0.40
codegen_flags: <defaults>
</compile_context>

<pallas_src>
import functools

import jax
import jax.numpy as jnp
from jax.experimental import pallas as pl
from jax.experimental.pallas import tpu as pltpu


def _linear_kernel(x_ref, w_ref, b_ref, o_ref, acc_ref):
    # grid = (N // tn, K // tk); axis 0 is parallel over output tiles,
    # axis 1 is the K reduction (fp32 accumulator held in VMEM scratch).
    @pl.when(pl.program_id(1) == 0)
    def _():
        acc_ref[...] = jnp.zeros_like(acc_ref)

    # x tile: (B, tk), w tile (native PyTorch layout): (tn, tk).
    # Contract last axis of x with last axis of w -> (B, tn).
    acc_ref[...] += jax.lax.dot_general(
        x_ref[...],
        w_ref[...],
        dimension_numbers=(((1,), (1,)), ((), ())),
        preferred_element_type=jnp.float32,
    )

    @pl.when(pl.program_id(1) == pl.num_programs(1) - 1)
    def _():
        # Bias is kept in fp32; add after full fp32 accumulation.
        o_ref[...] = (acc_ref[...] + b_ref[...]).astype(o_ref.dtype)


def _pick_tile(total, preferred):
    """Largest tile <= preferred that divides `total`, as a multiple of 128
    (or the full axis when the axis is small / has no 128-multiple divisor)."""
    if total <= preferred:
        return total
    t = (preferred // 128) * 128
    while t >= 128:
        if total % t == 0:
            return t
        t -= 128
    return total  # no tiling along this axis


def tokenalize_forward(x, weight, bias, vocab_size, input_dim, embed_dim,
                       *, tn=None, tk=None, compute_dtype=None):
    """x: (B, vocab_size, input_dim); weight: (V*E, V*D_in) [PyTorch layout];
    bias: (V*E,).  Returns (B, vocab_size, embed_dim).

    compute_dtype: optional dtype (e.g. jnp.bfloat16) for the x / weight HBM
    stream and the MXU matmul.  Accumulation and bias add stay in fp32."""
    B = x.shape[0]
    K = vocab_size * input_dim
    N = vocab_size * embed_dim
    assert weight.shape == (N, K) and bias.shape == (N,)

    out_dtype = x.dtype

    if compute_dtype is not None:
        x = x.astype(compute_dtype)
        weight = weight.astype(compute_dtype)

    # Adaptive tiles: prefer big (1024) tiles to stay near the HBM roofline,
    # but never exceed the axis and always divide it evenly.
    if tn is None:
        tn = _pick_tile(N, 1024)
    if tk is None:
        tk = _pick_tile(K, 1024)
    assert K % tk == 0 and N % tn == 0

    x_flat = x.reshape(B, K)                     # == torch .view(B, -1)
    b2d = bias.astype(jnp.float32).reshape(1, N)  # fp32 bias for the epilogue

    in_elem = jnp.dtype(x.dtype).itemsize
    out_elem = jnp.dtype(out_dtype).itemsize

    # VMEM budget: double-buffered x / weight / bias / out tiles + fp32 acc,
    # plus headroom.  Cap at 48 MiB so it also fits v7x's 64 MiB VMEM.
    need = 2 * (B * tk * in_elem + tn * tk * in_elem + tn * 4 + B * tn * out_elem)
    need += B * tn * 4
    vmem_limit = max(32 << 20, min(int(need * 1.5) + (1 << 20), 48 << 20))

    cost = pl.CostEstimate(
        flops=2 * B * K * N,
        bytes_accessed=K * N * in_elem + B * K * in_elem + N * 4 + B * N * out_elem,
        transcendentals=0,
    )

    out_flat = pl.pallas_call(
        _linear_kernel,
        out_shape=jax.ShapeDtypeStruct((B, N), out_dtype),
        grid_spec=pltpu.PrefetchScalarGridSpec(
            num_scalar_prefetch=0,
            grid=(N // tn, K // tk),
            in_specs=[
                pl.BlockSpec((B, tk), lambda n, k: (0, k)),    # x tile
                pl.BlockSpec((tn, tk), lambda n, k: (n, k)),   # W tile (native layout)
                pl.BlockSpec((1, tn), lambda n, k: (0, n)),    # bias tile
            ],
            out_specs=pl.BlockSpec((B, tn), lambda n, k: (0, n)),
            scratch_shapes=[pltpu.VMEM((B, tn), jnp.float32)],
        ),
        compiler_params=pltpu.CompilerParams(
            dimension_semantics=("parallel", "arbitrary"),
            vmem_limit_bytes=vmem_limit,
        ),
        cost_estimate=cost,
    )(x_flat, weight, b2d)

    return out_flat.reshape(B, vocab_size, embed_dim)


if __name__ == "__main__":
    # Small shapes consistent with the module.
    B = 8
    vocab_size = 8
    input_dim = 16
    embed_dim = 32
    K = vocab_size * input_dim     # 128
    N = vocab_size * embed_dim     # 256

    key = jax.random.PRNGKey(0)
    kx, kw, kb = jax.random.split(key, 3)

    # Deterministic param init, mimicking nn.Linear default U(-1/sqrt(K), 1/sqrt(K)).
    bound = 1.0 / jnp.sqrt(K)
    weight = jax.random.uniform(kw, (N, K), jnp.float32, -bound, bound)
    bias = jax.random.uniform(kb, (N,), jnp.float32, -bound, bound)
    x = jax.random.normal(kx, (B, vocab_size, input_dim), jnp.float32)

    fwd = functools.partial(
        tokenalize_forward,
        vocab_size=vocab_size, input_dim=input_dim, embed_dim=embed_dim,
    )

    # Reference in plain JAX (fp32).
    ref = (x.reshape(B, K) @ weight.T + bias).reshape(B, vocab_size, embed_dim)

    # fp32 path (exact-ish).
    out = jax.block_until_ready(fwd(x, weight, bias))
    assert out.shape == (B, vocab_size, embed_dim)
    assert jnp.allclose(out, ref, atol=1e-4, rtol=1e-4)

    # bf16 weight/x stream, fp32 accumulation (perf path) — looser tolerance.
    out_bf16 = jax.block_until_ready(fwd(x, weight, bias, compute_dtype=jnp.bfloat16))
    assert out_bf16.shape == (B, vocab_size, embed_dim)
    assert jnp.allclose(out_bf16, ref, atol=5e-2, rtol=5e-2)

    print("KERNEL_OK")
</pallas_src>

<mosaic_0001>
module attributes {stable_mosaic.version = 11 : i64} {
  func.func @_linear_kernel(%arg0: i32, %arg1: i32, %arg2: memref<8x128xf32, #tpu.memory_space<vmem>>, %arg3: memref<256x128xf32, #tpu.memory_space<vmem>>, %arg4: memref<1x256xf32, #tpu.memory_space<vmem>>, %arg5: memref<8x256xf32, #tpu.memory_space<vmem>>, %arg6: memref<8x256xf32, #tpu.memory_space<vmem>>) attributes {dimension_semantics = [#tpu.dimension_semantics<parallel>, #tpu.dimension_semantics<arbitrary>], iteration_bounds = array<i64: 1, 1>, scalar_prefetch = 0 : i64, scratch_operands = 1 : i64, tpu.core_type = #tpu.core_type<tc>, window_params = [{transform_indices = @transform_0, window_bounds = array<i64: 8, 128>}, {transform_indices = @transform_1, window_bounds = array<i64: 256, 128>}, {transform_indices = @transform_2, window_bounds = array<i64: 1, 256>}, {transform_indices = @transform_3, window_bounds = array<i64: 8, 256>}]} {
    %c0_i32 = arith.constant 0 : i32
    %0 = arith.cmpi eq, %arg1, %c0_i32 : i32
    %1 = arith.extui %0 : i1 to i32
    %c0_i32_0 = arith.constant 0 : i32
    %2 = arith.cmpi ne, %1, %c0_i32_0 : i32
    scf.if %2 {
      %cst_10 = arith.constant 0.000000e+00 : f32
      %12 = vector.broadcast %cst_10 : f32 to vector<8x256xf32>
      %c0_11 = arith.constant 0 : index
      %c0_12 = arith.constant 0 : index
      %13 = vector.load %arg6[%c0_11, %c0_12] : memref<8x256xf32, #tpu.memory_space<vmem>>, vector<8x256xf32>
      tpu.vector_store %arg6[%c0_11, %c0_12], %12 {strides = array<i32>} : memref<8x256xf32, #tpu.memory_space<vmem>>, vector<8x256xf32>,
    } else {
    }
    %c0 = arith.constant 0 : index
    %c0_1 = arith.constant 0 : index
    %3 = vector.load %arg6[%c0, %c0_1] : memref<8x256xf32, #tpu.memory_space<vmem>>, vector<8x256xf32>
    %c0_2 = arith.constant 0 : index
    %c0_3 = arith.constant 0 : index
    %4 = vector.load %arg2[%c0_2, %c0_3] : memref<8x128xf32, #tpu.memory_space<vmem>>, vector<8x128xf32>
    %c0_4 = arith.constant 0 : index
    %c0_5 = arith.constant 0 : index
    %5 = vector.load %arg3[%c0_4, %c0_5] : memref<256x128xf32, #tpu.memory_space<vmem>>, vector<256x128xf32>
    %cst = arith.constant dense<0.000000e+00> : vector<8x256xf32>
    %6 = tpu.matmul %4, %5, %cst {dimension_numbers = #tpu.dot_dimension_numbers<[1], [1], [0], [0], [0, 0, 1, 0], [], []>} : vector<8x128xf32>, vector<256x128xf32>, vector<8x256xf32> -> vector<8x256xf32>
    %7 = arith.addf %3, %6 : vector<8x256xf32>
    %c0_6 = arith.constant 0 : index
    %c0_7 = arith.constant 0 : index
    %8 = vector.load %arg6[%c0_6, %c0_7] : memref<8x256xf32, #tpu.memory_space<vmem>>, vector<8x256xf32>
    tpu.vector_store %arg6[%c0_6, %c0_7], %7 {strides = array<i32>} : memref<8x256xf32, #tpu.memory_space<vmem>>, vector<8x256xf32>,
    %c0_i32_8 = arith.constant 0 : i32
    %9 = arith.cmpi eq, %arg1, %c0_i32_8 : i32
    %10 = arith.extui %9 : i1 to i32
    %c0_i32_9 = arith.constant 0 : i32
    %11 = arith.cmpi ne, %10, %c0_i32_9 : i32
    scf.if %11 {
      %c0_10 = arith.constant 0 : index
      %c0_11 = arith.constant 0 : index
      %12 = vector.load %arg6[%c0_10, %c0_11] : memref<8x256xf32, #tpu.memory_space<vmem>>, vector<8x256xf32>
      %c0_12 = arith.constant 0 : index
      %c0_13 = arith.constant 0 : index
      %13 = vector.load %arg4[%c0_12, %c0_13] : memref<1x256xf32, #tpu.memory_space<vmem>>, vector<1x256xf32>
      %14 = vector.broadcast %13 : vector<1x256xf32> to vector<8x256xf32>
      %15 = arith.addf %12, %14 : vector<8x256xf32>
      %c0_14 = arith.constant 0 : index
      %c0_15 = arith.constant 0 : index
      %16 = vector.load %arg5[%c0_14, %c0_15] : memref<8x256xf32, #tpu.memory_space<vmem>>, vector<8x256xf32>
      tpu.vector_store %arg5[%c0_14, %c0_15], %15 {strides = array<i32>} : memref<8x256xf32, #tpu.memory_space<vmem>>, vector<8x256xf32>,
    } else {
    }
    return
  }
  func.func @transform_0(%arg0: i32, %arg1: i32) -> (i32, i32) {
    %c0_i32 = arith.constant 0 : i32
    %c0_i32_0 = arith.constant 0 : i32
    return %c0_i32, %arg1 : i32, i32
  }
  func.func @transform_1(%arg0: i32, %arg1: i32) -> (i32, i32) {
    %c0_i32 = arith.constant 0 : i32
    return %arg0, %arg1 : i32, i32
  }
  func.func @transform_2(%arg0: i32, %arg1: i32) -> (i32, i32) {
    %c0_i32 = arith.constant 0 : i32
    %c0_i32_0 = arith.constant 0 : i32
    return %c0_i32, %arg0 : i32, i32
  }
  func.func @transform_3(%arg0: i32, %arg1: i32) -> (i32, i32) {
    %c0_i32 = arith.constant 0 : i32
    %c0_i32_0 = arith.constant 0 : i32
    return %c0_i32, %arg0 : i32, i32
  }
}

</mosaic_0001>

<bundles_post_ra>
// kernel: tpu_custom_call.1
= control target key start
LH: loop header
LB: loop body
LE: loop exit
PB: predicated region body
PF: predicated region fallthrough
CT: control target
= control target key end

     0   :  { %8 = vsyncpa [#allocation4], 0  ;;  %s408_s0 = inlined_call_operand.hbm [shape: f32[8,128], index: 0, kind: input, shape index: {}]   ;;  %s409_s1 = inlined_call_operand.hbm [shape: f32[256,128], index: 1, kind: input, shape index: {}]   ;;  %s410_s2 = inlined_call_operand.vmem [shape: f32[1,256], index: 2, kind: input, shape index: {}]   ;;  %s411_s3 = inlined_call_operand.hbm [shape: f32[8,256], index: 3, kind: output, shape index: {}]  }
   0x1   :  { %9 = vsyncpa [#allocation7], 0 }
   0x2   :  { %10 = vsyncpa [#allocation5], 0  ;;  %s337_s12 = smov [#allocation3]   ;;  %s338_s14 = smov [#allocation6]  }
   0x3   :  { %s17_s13 = sshll.u32 %s337_s12, 4  ;;  %s26_s15 = sshll.u32 %s338_s14, 4  ;;  %s18_s13 = int_to_ptr.vmem [resolvable:$true] %s17_s13  ;;  %s362_s15 = int_to_ptr.vmem [resolvable:$true] %s26_s15 }
   0x4   :  { %s265_s18 = scalar_lea.hbm %s408_s0, 128 }
   0x5   :  { %p266_p0 = scmp.ne.s32.totalorder %s408_s0, %s265_s18  ;;  %p269_p1 = scmp.lt.u32.totalorder %s265_s18, %s408_s0 }
   0x7   :  { %p271_p2 = pnand %p269_p1, %p266_p0 }
   0x9   :  { %274 = shalt.err (!%p271_p2)
}
   0xa   :  { %s275_s23 = scalar_lea.vmem %s18_s13, 128  ;;  %p280_p4 = scmp.lt.s32.totalorder %s18_s13, %s18_s13 }
   0xb   :  { %p276_p3 = scmp.ne.s32.totalorder %s18_s13, %s275_s23  ;;  %p281_p5 = scmp.lt.s32.totalorder %s275_s23, %s275_s23 }
   0xd   :  { %p282_p6 = por %p281_p5, %p280_p4 }
   0xf   :  { %p283_p7 = pnand %p282_p6, %p276_p3 }
  0x11   :  { %286 = shalt.err (!%p283_p7)
}
  0x12   :  { %20 = dma.hbm_to_vmem [thread:$0]  %s408_s0, 128, %s18_s13, [#allocation4]  }
  0x13   :  { %s287_s28 = scalar_lea.hbm %s409_s1, 4096 }
  0x14   :  { %p288_p8 = scmp.ne.s32.totalorder %s409_s1, %s287_s28  ;;  %p291_p9 = scmp.lt.u32.totalorder %s287_s28, %s409_s1 }
  0x16   :  { %p293_p10 = pnand %p291_p9, %p288_p8 }
  0x18   :  { %296 = shalt.err (!%p293_p10)
}
  0x19   :  { %s297_s6 = scalar_lea.vmem %s362_s15, 4096  ;;  %p302_p12 = scmp.lt.s32.totalorder %s362_s15, %s362_s15 }
  0x1a   :  { %p298_p11 = scmp.ne.s32.totalorder %s362_s15, %s297_s6  ;;  %p303_p13 = scmp.lt.s32.totalorder %s297_s6, %s297_s6 }
  0x1c   :  { %p304_p0 = por %p303_p13, %p302_p12 }
  0x1e   :  { %p305_p1 = pnand %p304_p0, %p298_p11 }
  0x20   :  { %308 = shalt.err (!%p305_p1)
}
  0x21   :  { %s339_s0 = smov 128   ;;  %s340_s7 = smov 8  }
  0x22   :  { %32 = dma.hbm_to_vmem [thread:$0]  %s409_s1, 4096, %s362_s15, [#allocation7], %s339_s0, %s339_s0, %s340_s7  }
  0x23   :  { %331 = dma.done.wait [#allocation4], 128  }
  0x24   :  { %332 = vsyncadd [#allocation4], 4294967168 }
  0x25   :  { %333 = dma.done.wait [#allocation7], 4096  }
  0x26   :  { %334 = vsyncadd [#allocation7], 4294963200  ;;  %v66_v0 = vld [vmem:[#allocation6 + $0x80] sm:$0xff]  ;;  %v67_v1 = vld [vmem:[#allocation6 + $0x88] sm:$0xff]  ;;  %v164_v49 = vlaneseq  ;;  %s341_s11 = smov [#allocation8]  }
  0x27   :  { %v50_v2 = vld [vmem:[#allocation6] sm:$0xff]  ;;  %v228_v3 = vpack.c.bf16 %v67_v1, %v66_v0  ;;  %v51_v4 = vld [vmem:[#allocation6 + $0x8] sm:$0xff]  ;;  %v68_v5 = vld [vmem:[#allocation6 + $0x90] sm:$0xff]  ;;  %s184_s12 = sshll.u32 %s341_s11, 4  ;;  %s185_s12 = int_to_ptr.vmem [resolvable:$true] %s184_s12 }
  0x28   :  { %v69_v6 = vld [vmem:[#allocation6 + $0x98] sm:$0xff]  ;;  %v230_v7 = vpack.c.bf16 %v51_v4, %v50_v2  ;;  %v52_v9 = vld [vmem:[#allocation6 + $0x10] sm:$0xff]  ;;  %v70_v11 = vld [vmem:[#allocation6 + $0xa0] sm:$0xff]  ;;  %v165_v50 = vshrl.u32 %v164_v49, 7  ;;  %s309_s13 = scalar_lea.vmem %s185_s12, 256  ;;  %p314_p3 = scmp.lt.s32.totalorder %s185_s12, %s185_s12 }
  0x29   :  { %v232_v8 = vpack.c.bf16 %v69_v6, %v68_v5  ;;  %229 = vmatprep.subr.bf16.mxu0 %v228_v3  ;;  %v53_v10 = vld [vmem:[#allocation6 + $0x18] sm:$0xff]  ;;  %v71_v12 = vld [vmem:[#allocation6 + $0xa8] sm:$0xff]  ;;  %v54_v16 = vld [vmem:[#allocation6 + $0x20] sm:$0xff]  ;;  %p310_p2 = scmp.ne.s32.totalorder %s185_s12, %s309_s13  ;;  %p315_p4 = scmp.lt.s32.totalorder %s309_s13, %s309_s13 }
  0x2a   :  { %231 = vmatpush3.bf16.xpose.msra.mxu0 %v230_v7  ;;  %v234_v13 = vpack.c.bf16 %v53_v10, %v52_v9  ;;  %v236_v14 = vpack.c.bf16 %v71_v12, %v70_v11  ;;  %v49_v15 = vld [vmem:[#allocation3] sm:$0xff]  ;;  %v55_v17 = vld [vmem:[#allocation6 + $0x28] sm:$0xff]  ;;  %v72_v18 = vld [vmem:[#allocation6 + $0xb0] sm:$0xff]  ;;  %v166_v51 = vsub.s32 0, %v165_v50  ;;  %v170_v53 = vsub.s32 1, %v165_v50 }
  0x2b   :  { %233 = vmatprep.subr.bf16.mxu0 %v232_v8  ;;  %226 = vmatprep.mubr.f32.mxu0 %v49_v15  ;;  %v73_v19 = vld [vmem:[#allocation6 + $0xb8] sm:$0xff]  ;;  %v238_v20 = vpack.c.bf16 %v55_v17, %v54_v16  ;;  %v56_v22 = vld [vmem:[#allocation6 + $0x30] sm:$0xff]  ;;  %v74_v24 = vld [vmem:[#allocation6 + $0xc0] sm:$0xff]  ;;  %p316_p5 = por %p315_p4, %p314_p3 }
  0x2c   :  { %v240_v21 = vpack.c.bf16 %v73_v19, %v72_v18  ;;  %v57_v23 = vld [vmem:[#allocation6 + $0x38] sm:$0xff]  ;;  %v75_v25 = vld [vmem:[#allocation6 + $0xc8] sm:$0xff]  ;;  %v58_v28 = vld [vmem:[#allocation6 + $0x40] sm:$0xff] }
  0x2d   :  { %v242_v26 = vpack.c.bf16 %v57_v23, %v56_v22  ;;  %v244_v27 = vpack.c.bf16 %v75_v25, %v74_v24  ;;  %v59_v29 = vld [vmem:[#allocation6 + $0x48] sm:$0xff]  ;;  %v76_v30 = vld [vmem:[#allocation6 + $0xd0] sm:$0xff]  ;;  %v77_v31 = vld [vmem:[#allocation6 + $0xd8] sm:$0xff]  ;;  %p317_p6 = pnand %p316_p5, %p310_p2 }
  0x2e   :  { %v246_v32 = vpack.c.bf16 %v59_v29, %v58_v28  ;;  %v248_v33 = vpack.c.bf16 %v77_v31, %v76_v30  ;;  %v60_v34 = vld [vmem:[#allocation6 + $0x50] sm:$0xff]  ;;  %v61_v35 = vld [vmem:[#allocation6 + $0x58] sm:$0xff]  ;;  %v78_v36 = vld [vmem:[#allocation6 + $0xe0] sm:$0xff] }
  0x2f   :  { %v79_v37 = vld [vmem:[#allocation6 + $0xe8] sm:$0xff]  ;;  %v250_v38 = vpack.c.bf16 %v61_v35, %v60_v34  ;;  %v62_v40 = vld [vmem:[#allocation6 + $0x60] sm:$0xff]  ;;  %v80_v42 = vld [vmem:[#allocation6 + $0xf0] sm:$0xff] }
  0x30   :  { %v252_v39 = vpack.c.bf16 %v79_v37, %v78_v36  ;;  %v63_v41 = vld [vmem:[#allocation6 + $0x68] sm:$0xff]  ;;  %v81_v43 = vld [vmem:[#allocation6 + $0xf8] sm:$0xff]  ;;  %v64_v46 = vld [vmem:[#allocation6 + $0x70] sm:$0xff] }
  0x31   :  { %v254_v44 = vpack.c.bf16 %v63_v41, %v62_v40  ;;  %v256_v45 = vpack.c.bf16 %v81_v43, %v80_v42  ;;  %v65_v47 = vld [vmem:[#allocation6 + $0x78] sm:$0xff] }
  0x32   :  { %235 = vmatpush3.bf16.xpose.msra.mxu0 %v234_v13  ;;  %v258_v48 = vpack.c.bf16 %v65_v47, %v64_v46  ;;  %v162_v52 = vld [vmem:[%s410_s2] sm:$0x3] }
  0x33   :  { %237 = vmatprep.subr.bf16.mxu0 %v236_v14  ;;  %v167_v54 = vrot.slane %v162_v52, %v166_v51  ;;  %v171_v55 = vrot.slane %v162_v52, %v170_v53 }
  0x3a   :  { %239 = vmatpush3.bf16.xpose.msra.mxu0 %v238_v20 }
  0x3b   :  { %241 = vmatprep.subr.bf16.mxu0 %v240_v21 }
  0x42   :  { %243 = vmatpush3.bf16.xpose.msra.mxu0 %v242_v26 }
  0x43   :  { %245 = vmatprep.subr.bf16.mxu0 %v244_v27 }
  0x4a   :  { %247 = vmatpush3.bf16.xpose.msra.mxu0 %v246_v32 }
  0x4b   :  { %249 = vmatprep.subr.bf16.mxu0 %v248_v33 }
  0x52   :  { %251 = vmatpush3.bf16.xpose.msra.mxu0 %v250_v38 }
  0x53   :  { %253 = vmatprep.subr.bf16.mxu0 %v252_v39 }
  0x5a   :  { %255 = vmatpush3.bf16.xpose.msra.mxu0 %v254_v44 }
  0x5b   :  { %257 = vmatprep.subr.bf16.mxu0 %v256_v45 }
  0x62   :  { %259 = vmatpush3.bf16.xpose.msra.mxu0 %v258_v48 }
  0x69   :  { %227 = vmatmul.mubr.f32.vlgmr.msra.gmra.mrb[0].mxu0 %v49_v15 }
 0x13c   :  { %v148_v56 = vpop.f32.mrb[0].mxu0 }
 0x13d   :  { %v174_v57 = vadd.f32 %v167_v54, %v148_v56  ;;  %v150_v58 = vpop.f32.mrb[1].mxu0 }
 0x13e   :  { %v175_v59 = vadd.f32 %v171_v55, %v150_v58 }
 0x13f   :  { %176 = vst [vmem:[#allocation8] sm:$0xff] %v174_v57 }
 0x140   :  { %177 = vst [vmem:[#allocation8 + $0x8] sm:$0xff] %v175_v59 }
 0x141   :  { %320 = shalt.err (!%p317_p6)
}
 0x142   :  { %s321_s15 = scalar_lea.hbm %s411_s3, 256 }
 0x143   :  { %p322_p7 = scmp.ne.s32.totalorder %s411_s3, %s321_s15  ;;  %p325_p8 = scmp.lt.u32.totalorder %s321_s15, %s411_s3 }
 0x145   :  { %p327_p9 = pnand %p325_p8, %p322_p7 }
 0x147   :  { %330 = shalt.err (!%p327_p9)
}
 0x148   :  { %187 = dma.vmem_to_hbm [thread:$0]  %s185_s12, 256, %s411_s3, [#allocation5]  }
 0x149   :  { %335 = dma.done.wait [#allocation5], 256  }
 0x14a   :  { %336 = vsyncadd [#allocation5], 4294967040 }
 0x14b   :  { %191 = vsyncpa [#allocation4], 1 }
 0x14c   :  { %192 = vsyncpa [#allocation7], 1 }
 0x14d   :  { %193 = vsyncpa [#allocation5], 1 }

</bundles_post_ra>
